<compile_context>
chip_gen: v6e
topology: v6e:2x2x1
jax: 0.10.0
libtpu: 0.0.40
codegen_flags: <defaults>
</compile_context>

<pallas_src>
import functools

import jax
import jax.numpy as jnp
from jax.experimental import pallas as pl
from jax.experimental.pallas import tpu as pltpu


def _space_to_depth_kernel(x_ref, o_ref, s_ref, *, bs, c_blk):
    """x_ref: (c_blk, h_tile, W); o_ref: (c_blk*bs*bs, hb_tile, Wb); s_ref: (W, hb_tile)."""
    _, h_tile, w = x_ref.shape
    hb = h_tile // bs
    wb = w // bs
    for c in range(c_blk):
        for i in range(bs):
            # Phase-i rows of channel c -> (hb, W).  All indexers are slices
            # (never a bare int mixed with a strided slice): Mosaic lowers this
            # to a sublane-strided vld and the interpreter discharges it.
            xi = x_ref[pl.ds(c, 1), pl.ds(i, hb, stride=bs), :]
            # Put W on the sublane axis so the j-deinterleave is also a cheap
            # sublane-strided access (never stride along lanes).
            s_ref[...] = xi.reshape(hb, w).T
            base = c * (bs * bs) + i * bs
            for j in range(bs):
                yj = s_ref[pl.ds(j, wb, stride=bs), :]            # (wb, hb)
                o_ref[pl.ds(base + j, 1), :, :] = yj.T.reshape(1, hb, wb)


def _vmem_budget_bytes():
    """<= 3/4 of physical VMEM when queryable; conservative 48 MiB otherwise."""
    try:
        info = pltpu.get_tpu_info()
        cap = getattr(info, "vmem_capacity_bytes", None)
        if cap:
            return int(cap) * 3 // 4
    except Exception:
        pass
    return 48 * 1024 * 1024


def _pick_tiling(N, C, H, W, bs, itemsize):
    """Choose (c_blk, hb_tile): ~4 MiB slabs, lane-dense scratch, bounded unroll."""
    Hb = H // bs
    sub = max(8, 32 // max(1, itemsize))        # sublane multiple for packed dtypes
    PLANE_CAP = 512 * 1024                      # bytes of one (hb_tile, W) phase plane
    TARGET_SLAB = 4 * 1024 * 1024               # input bytes per grid step

    # hb_tile: divisor of Hb that is a multiple of `sub` (or Hb itself).
    candidates = sorted({Hb, *[d for d in range(sub, Hb, sub) if Hb % d == 0]})
    fitting = [d for d in candidates if d * W * itemsize <= PLANE_CAP]
    pool = fitting if fitting else [candidates[0]]
    pref = [d for d in pool if d % 128 == 0]    # lane-dense transposes when possible
    hb_tile = min(pref) if pref else max(pool)

    # c_blk: divisor of C, bounded unroll (c_blk*bs*bs <= 32), slab <= ~4 MiB.
    chan_bytes = hb_tile * bs * W * itemsize
    max_unroll = max(1, min(8, 32 // (bs * bs)))
    c_blk = 1
    for d in range(1, min(C, max_unroll) + 1):
        if C % d == 0 and d * chan_bytes <= max(TARGET_SLAB, chan_bytes):
            c_blk = d

    def n_steps(cb, ht):
        return N * (C // cb) * (Hb // ht)

    # Keep >= 2 grid steps when possible, and prefer an even total (2 TCs on v7x).
    if n_steps(c_blk, hb_tile) < 2 and c_blk > 1:
        for d in range(c_blk - 1, 0, -1):
            if C % d == 0:
                c_blk = d
                if n_steps(c_blk, hb_tile) >= 2:
                    break
    if n_steps(c_blk, hb_tile) < 2:
        smaller = [d for d in candidates if d < hb_tile]
        if smaller:
            hb_tile = max(smaller)
    if n_steps(c_blk, hb_tile) > 1 and n_steps(c_blk, hb_tile) % 2 == 1:
        half = hb_tile // 2
        if hb_tile % 2 == 0 and half > 0 and Hb % half == 0 and half % sub == 0:
            hb_tile = half
        else:
            for d in range(c_blk - 1, 0, -1):
                if C % d == 0 and (C // d) % 2 == 0:
                    c_blk = d
                    break
    return c_blk, hb_tile


def space_to_depth(x, block_size):
    bs = int(block_size)
    N, C, H, W = x.shape
    if bs == 1:
        return x
    assert H % bs == 0 and W % bs == 0, "H and W must be divisible by block_size"
    Hb, Wb = H // bs, W // bs

    itemsize = jnp.dtype(x.dtype).itemsize
    c_blk, hb_tile = _pick_tiling(N, C, H, W, bs, itemsize)
    h_tile = hb_tile * bs

    in_bytes = c_blk * h_tile * W * itemsize
    out_bytes = in_bytes
    scratch_bytes = W * hb_tile * itemsize
    needed = 2 * (in_bytes + out_bytes) + scratch_bytes     # double-buffered blocks
    vmem_limit = int(min(max(32 * 1024 * 1024, int(1.4 * needed)),
                         _vmem_budget_bytes()))

    kernel = functools.partial(_space_to_depth_kernel, bs=bs, c_blk=c_blk)
    return pl.pallas_call(
        kernel,
        out_shape=jax.ShapeDtypeStruct((N, C * bs * bs, Hb, Wb), x.dtype),
        grid=(N, C // c_blk, Hb // hb_tile),
        in_specs=[
            pl.BlockSpec((None, c_blk, h_tile, W),
                         lambda n, cb, hb: (n, cb, hb, 0)),
        ],
        out_specs=pl.BlockSpec((None, c_blk * bs * bs, hb_tile, Wb),
                               lambda n, cb, hb: (n, cb, hb, 0)),
        scratch_shapes=[pltpu.VMEM((W, hb_tile), x.dtype)],
        compiler_params=pltpu.CompilerParams(
            dimension_semantics=("parallel", "parallel", "parallel"),
            vmem_limit_bytes=vmem_limit,
        ),
        cost_estimate=pl.CostEstimate(
            flops=0,
            transcendentals=0,
            bytes_accessed=2 * x.size * itemsize,
        ),
    )(x)


def _space_to_depth_ref(x, bs):
    """Pure-JAX reference mirroring the PyTorch forward exactly."""
    N, C, H, W = x.shape
    y = x.reshape(N, C, H // bs, bs, W // bs, bs)
    y = jnp.transpose(y, (0, 1, 3, 5, 2, 4))
    return y.reshape(N, C * bs * bs, H // bs, W // bs)


if __name__ == "__main__":
    key = jax.random.PRNGKey(0)
    bs = 2
    x = jax.random.normal(key, (2, 4, 16, 16), dtype=jnp.float32)

    out = jax.block_until_ready(space_to_depth(x, bs))
    ref = _space_to_depth_ref(x, bs)

    assert out.shape == (2, 4 * bs * bs, 8, 8), out.shape
    assert out.dtype == x.dtype, out.dtype
    assert bool(jnp.array_equal(out, ref)), "Pallas output != reference"
    print("KERNEL_OK")
</pallas_src>

<mosaic_0001>
module attributes {stable_mosaic.version = 11 : i64} {
  func.func @_space_to_depth_kernel(%arg0: i32, %arg1: i32, %arg2: i32, %arg3: memref<1x4x16x16xf32, #tpu.memory_space<vmem>>, %arg4: memref<1x16x8x8xf32, #tpu.memory_space<vmem>>, %arg5: memref<16x8xf32, #tpu.memory_space<vmem>>) attributes {dimension_semantics = [#tpu.dimension_semantics<parallel>, #tpu.dimension_semantics<parallel>, #tpu.dimension_semantics<parallel>], iteration_bounds = array<i64: 2, 1, 1>, scalar_prefetch = 0 : i64, scratch_operands = 1 : i64, tpu.core_type = #tpu.core_type<tc>, window_params = [{transform_indices = @transform_0, window_bounds = array<i64: 1, 4, 16, 16>}, {transform_indices = @transform_1, window_bounds = array<i64: 1, 16, 8, 8>}]} {
    %c0 = arith.constant 0 : index
    %c0_0 = arith.constant 0 : index
    %c0_1 = arith.constant 0 : index
    %c0_2 = arith.constant 0 : index
    %0 = tpu.strided_load %arg3[%c0, %c0_0, %c0_1, %c0_2] {strides = array<i32: 1, 1, 2, 1>} : memref<1x4x16x16xf32, #tpu.memory_space<vmem>>, vector<1x1x8x16xf32>
    %1 = vector.shape_cast %0 : vector<1x1x8x16xf32> to vector<1x8x16xf32>
    %2 = vector.shape_cast %1 : vector<1x8x16xf32> to vector<8x16xf32>
    %3 = tpu.transpose %2, [1, 0] : vector<8x16xf32> -> vector<16x8xf32>
    %c0_3 = arith.constant 0 : index
    %c0_4 = arith.constant 0 : index
    %4 = vector.load %arg5[%c0_3, %c0_4] : memref<16x8xf32, #tpu.memory_space<vmem>>, vector<16x8xf32>
    tpu.vector_store %arg5[%c0_3, %c0_4], %3 {strides = array<i32>} : memref<16x8xf32, #tpu.memory_space<vmem>>, vector<16x8xf32>,
    %c0_5 = arith.constant 0 : index
    %c0_6 = arith.constant 0 : index
    %5 = tpu.strided_load %arg5[%c0_5, %c0_6] {strides = array<i32: 2, 1>} : memref<16x8xf32, #tpu.memory_space<vmem>>, vector<8x8xf32>
    %6 = tpu.transpose %5, [1, 0] : vector<8x8xf32> -> vector<8x8xf32>
    %7 = vector.shape_cast %6 : vector<8x8xf32> to vector<1x8x8xf32>
    %c0_7 = arith.constant 0 : index
    %c0_8 = arith.constant 0 : index
    %c0_9 = arith.constant 0 : index
    %c0_10 = arith.constant 0 : index
    %8 = vector.load %arg4[%c0_7, %c0_8, %c0_9, %c0_10] : memref<1x16x8x8xf32, #tpu.memory_space<vmem>>, vector<1x1x8x8xf32>
    %9 = vector.shape_cast %8 : vector<1x1x8x8xf32> to vector<1x8x8xf32>
    %10 = vector.shape_cast %7 : vector<1x8x8xf32> to vector<1x1x8x8xf32>
    tpu.vector_store %arg4[%c0_7, %c0_8, %c0_9, %c0_10], %10 {strides = array<i32>} : memref<1x16x8x8xf32, #tpu.memory_space<vmem>>, vector<1x1x8x8xf32>,
    %c1 = arith.constant 1 : index
    %c0_11 = arith.constant 0 : index
    %11 = tpu.strided_load %arg5[%c1, %c0_11] {strides = array<i32: 2, 1>} : memref<16x8xf32, #tpu.memory_space<vmem>>, vector<8x8xf32>
    %12 = tpu.transpose %11, [1, 0] : vector<8x8xf32> -> vector<8x8xf32>
    %13 = vector.shape_cast %12 : vector<8x8xf32> to vector<1x8x8xf32>
    %c0_12 = arith.constant 0 : index
    %c1_13 = arith.constant 1 : index
    %c0_14 = arith.constant 0 : index
    %c0_15 = arith.constant 0 : index
    %14 = vector.load %arg4[%c0_12, %c1_13, %c0_14, %c0_15] : memref<1x16x8x8xf32, #tpu.memory_space<vmem>>, vector<1x1x8x8xf32>
    %15 = vector.shape_cast %14 : vector<1x1x8x8xf32> to vector<1x8x8xf32>
    %16 = vector.shape_cast %13 : vector<1x8x8xf32> to vector<1x1x8x8xf32>
    tpu.vector_store %arg4[%c0_12, %c1_13, %c0_14, %c0_15], %16 {strides = array<i32>} : memref<1x16x8x8xf32, #tpu.memory_space<vmem>>, vector<1x1x8x8xf32>,
    %c0_16 = arith.constant 0 : index
    %c0_17 = arith.constant 0 : index
    %c1_18 = arith.constant 1 : index
    %c0_19 = arith.constant 0 : index
    %17 = tpu.strided_load %arg3[%c0_16, %c0_17, %c1_18, %c0_19] {strides = array<i32: 1, 1, 2, 1>} : memref<1x4x16x16xf32, #tpu.memory_space<vmem>>, vector<1x1x8x16xf32>
    %18 = vector.shape_cast %17 : vector<1x1x8x16xf32> to vector<1x8x16xf32>
    %19 = vector.shape_cast %18 : vector<1x8x16xf32> to vector<8x16xf32>
    %20 = tpu.transpose %19, [1, 0] : vector<8x16xf32> -> vector<16x8xf32>
    %c0_20 = arith.constant 0 : index
    %c0_21 = arith.constant 0 : index
    %21 = vector.load %arg5[%c0_20, %c0_21] : memref<16x8xf32, #tpu.memory_space<vmem>>, vector<16x8xf32>
    tpu.vector_store %arg5[%c0_20, %c0_21], %20 {strides = array<i32>} : memref<16x8xf32, #tpu.memory_space<vmem>>, vector<16x8xf32>,
    %c0_22 = arith.constant 0 : index
    %c0_23 = arith.constant 0 : index
    %22 = tpu.strided_load %arg5[%c0_22, %c0_23] {strides = array<i32: 2, 1>} : memref<16x8xf32, #tpu.memory_space<vmem>>, vector<8x8xf32>
    %23 = tpu.transpose %22, [1, 0] : vector<8x8xf32> -> vector<8x8xf32>
    %24 = vector.shape_cast %23 : vector<8x8xf32> to vector<1x8x8xf32>
    %c0_24 = arith.constant 0 : index
    %c2 = arith.constant 2 : index
    %c0_25 = arith.constant 0 : index
    %c0_26 = arith.constant 0 : index
    %25 = vector.load %arg4[%c0_24, %c2, %c0_25, %c0_26] : memref<1x16x8x8xf32, #tpu.memory_space<vmem>>, vector<1x1x8x8xf32>
    %26 = vector.shape_cast %25 : vector<1x1x8x8xf32> to vector<1x8x8xf32>
    %27 = vector.shape_cast %24 : vector<1x8x8xf32> to vector<1x1x8x8xf32>
    tpu.vector_store %arg4[%c0_24, %c2, %c0_25, %c0_26], %27 {strides = array<i32>} : memref<1x16x8x8xf32, #tpu.memory_space<vmem>>, vector<1x1x8x8xf32>,
    %c1_27 = arith.constant 1 : index
    %c0_28 = arith.constant 0 : index
    %28 = tpu.strided_load %arg5[%c1_27, %c0_28] {strides = array<i32: 2, 1>} : memref<16x8xf32, #tpu.memory_space<vmem>>, vector<8x8xf32>
    %29 = tpu.transpose %28, [1, 0] : vector<8x8xf32> -> vector<8x8xf32>
    %30 = vector.shape_cast %29 : vector<8x8xf32> to vector<1x8x8xf32>
    %c0_29 = arith.constant 0 : index
    %c3 = arith.constant 3 : index
    %c0_30 = arith.constant 0 : index
    %c0_31 = arith.constant 0 : index
    %31 = vector.load %arg4[%c0_29, %c3, %c0_30, %c0_31] : memref<1x16x8x8xf32, #tpu.memory_space<vmem>>, vector<1x1x8x8xf32>
    %32 = vector.shape_cast %31 : vector<1x1x8x8xf32> to vector<1x8x8xf32>
    %33 = vector.shape_cast %30 : vector<1x8x8xf32> to vector<1x1x8x8xf32>
    tpu.vector_store %arg4[%c0_29, %c3, %c0_30, %c0_31], %33 {strides = array<i32>} : memref<1x16x8x8xf32, #tpu.memory_space<vmem>>, vector<1x1x8x8xf32>,
    %c0_32 = arith.constant 0 : index
    %c1_33 = arith.constant 1 : index
    %c0_34 = arith.constant 0 : index
    %c0_35 = arith.constant 0 : index
    %34 = tpu.strided_load %arg3[%c0_32, %c1_33, %c0_34, %c0_35] {strides = array<i32: 1, 1, 2, 1>} : memref<1x4x16x16xf32, #tpu.memory_space<vmem>>, vector<1x1x8x16xf32>
    %35 = vector.shape_cast %34 : vector<1x1x8x16xf32> to vector<1x8x16xf32>
    %36 = vector.shape_cast %35 : vector<1x8x16xf32> to vector<8x16xf32>
    %37 = tpu.transpose %36, [1, 0] : vector<8x16xf32> -> vector<16x8xf32>
    %c0_36 = arith.constant 0 : index
    %c0_37 = arith.constant 0 : index
    %38 = vector.load %arg5[%c0_36, %c0_37] : memref<16x8xf32, #tpu.memory_space<vmem>>, vector<16x8xf32>
    tpu.vector_store %arg5[%c0_36, %c0_37], %37 {strides = array<i32>} : memref<16x8xf32, #tpu.memory_space<vmem>>, vector<16x8xf32>,
    %c0_38 = arith.constant 0 : index
    %c0_39 = arith.constant 0 : index
    %39 = tpu.strided_load %arg5[%c0_38, %c0_39] {strides = array<i32: 2, 1>} : memref<16x8xf32, #tpu.memory_space<vmem>>, vector<8x8xf32>
    %40 = tpu.transpose %39, [1, 0] : vector<8x8xf32> -> vector<8x8xf32>
    %41 = vector.shape_cast %40 : vector<8x8xf32> to vector<1x8x8xf32>
    %c0_40 = arith.constant 0 : index
    %c4 = arith.constant 4 : index
    %c0_41 = arith.constant 0 : index
    %c0_42 = arith.constant 0 : index
    %42 = vector.load %arg4[%c0_40, %c4, %c0_41, %c0_42] : memref<1x16x8x8xf32, #tpu.memory_space<vmem>>, vector<1x1x8x8xf32>
    %43 = vector.shape_cast %42 : vector<1x1x8x8xf32> to vector<1x8x8xf32>
    %44 = vector.shape_cast %41 : vector<1x8x8xf32> to vector<1x1x8x8xf32>
    tpu.vector_store %arg4[%c0_40, %c4, %c0_41, %c0_42], %44 {strides = array<i32>} : memref<1x16x8x8xf32, #tpu.memory_space<vmem>>, vector<1x1x8x8xf32>,
    %c1_43 = arith.constant 1 : index
    %c0_44 = arith.constant 0 : index
    %45 = tpu.strided_load %arg5[%c1_43, %c0_44] {strides = array<i32: 2, 1>} : memref<16x8xf32, #tpu.memory_space<vmem>>, vector<8x8xf32>
    %46 = tpu.transpose %45, [1, 0] : vector<8x8xf32> -> vector<8x8xf32>
    %47 = vector.shape_cast %46 : vector<8x8xf32> to vector<1x8x8xf32>
    %c0_45 = arith.constant 0 : index
    %c5 = arith.constant 5 : index
    %c0_46 = arith.constant 0 : index
    %c0_47 = arith.constant 0 : index
    %48 = vector.load %arg4[%c0_45, %c5, %c0_46, %c0_47] : memref<1x16x8x8xf32, #tpu.memory_space<vmem>>, vector<1x1x8x8xf32>
    %49 = vector.shape_cast %48 : vector<1x1x8x8xf32> to vector<1x8x8xf32>
    %50 = vector.shape_cast %47 : vector<1x8x8xf32> to vector<1x1x8x8xf32>
    tpu.vector_store %arg4[%c0_45, %c5, %c0_46, %c0_47], %50 {strides = array<i32>} : memref<1x16x8x8xf32, #tpu.memory_space<vmem>>, vector<1x1x8x8xf32>,
    %c0_48 = arith.constant 0 : index
    %c1_49 = arith.constant 1 : index
    %c1_50 = arith.constant 1 : index
    %c0_51 = arith.constant 0 : index
    %51 = tpu.strided_load %arg3[%c0_48, %c1_49, %c1_50, %c0_51] {strides = array<i32: 1, 1, 2, 1>} : memref<1x4x16x16xf32, #tpu.memory_space<vmem>>, vector<1x1x8x16xf32>
    %52 = vector.shape_cast %51 : vector<1x1x8x16xf32> to vector<1x8x16xf32>
    %53 = vector.shape_cast %52 : vector<1x8x16xf32> to vector<8x16xf32>
    %54 = tpu.transpose %53, [1, 0] : vector<8x16xf32> -> vector<16x8xf32>
    %c0_52 = arith.constant 0 : index
    %c0_53 = arith.constant 0 : index
    %55 = vector.load %arg5[%c0_52, %c0_53] : memref<16x8xf32, #tpu.memory_space<vmem>>, vector<16x8xf32>
    tpu.vector_store %arg5[%c0_52, %c0_53], %54 {strides = array<i32>} : memref<16x8xf32, #tpu.memory_space<vmem>>, vector<16x8xf32>,
    %c0_54 = arith.constant 0 : index
    %c0_55 = arith.constant 0 : index
    %56 = tpu.strided_load %arg5[%c0_54, %c0_55] {strides = array<i32: 2, 1>} : memref<16x8xf32, #tpu.memory_space<vmem>>, vector<8x8xf32>
    %57 = tpu.transpose %56, [1, 0] : vector<8x8xf32> -> vector<8x8xf32>
    %58 = vector.shape_cast %57 : vector<8x8xf32> to vector<1x8x8xf32>
    %c0_56 = arith.constant 0 : index
    %c6 = arith.constant 6 : index
    %c0_57 = arith.constant 0 : index
    %c0_58 = arith.constant 0 : index
    %59 = vector.load %arg4[%c0_56, %c6, %c0_57, %c0_58] : memref<1x16x8x8xf32, #tpu.memory_space<vmem>>, vector<1x1x8x8xf32>
    %60 = vector.shape_cast %59 : vector<1x1x8x8xf32> to vector<1x8x8xf32>
    %61 = vector.shape_cast %58 : vector<1x8x8xf32> to vector<1x1x8x8xf32>
    tpu.vector_store %arg4[%c0_56, %c6, %c0_57, %c0_58], %61 {strides = array<i32>} : memref<1x16x8x8xf32, #tpu.memory_space<vmem>>, vector<1x1x8x8xf32>,
    %c1_59 = arith.constant 1 : index
    %c0_60 = arith.constant 0 : index
    %62 = tpu.strided_load %arg5[%c1_59, %c0_60] {strides = array<i32: 2, 1>} : memref<16x8xf32, #tpu.memory_space<vmem>>, vector<8x8xf32>
    %63 = tpu.transpose %62, [1, 0] : vector<8x8xf32> -> vector<8x8xf32>
    %64 = vector.shape_cast %63 : vector<8x8xf32> to vector<1x8x8xf32>
    %c0_61 = arith.constant 0 : index
    %c7 = arith.constant 7 : index
    %c0_62 = arith.constant 0 : index
    %c0_63 = arith.constant 0 : index
    %65 = vector.load %arg4[%c0_61, %c7, %c0_62, %c0_63] : memref<1x16x8x8xf32, #tpu.memory_space<vmem>>, vector<1x1x8x8xf32>
    %66 = vector.shape_cast %65 : vector<1x1x8x8xf32> to vector<1x8x8xf32>
    %67 = vector.shape_cast %64 : vector<1x8x8xf32> to vector<1x1x8x8xf32>
    tpu.vector_store %arg4[%c0_61, %c7, %c0_62, %c0_63], %67 {strides = array<i32>} : memref<1x16x8x8xf32, #tpu.memory_space<vmem>>, vector<1x1x8x8xf32>,
    %c0_64 = arith.constant 0 : index
    %c2_65 = arith.constant 2 : index
    %c0_66 = arith.constant 0 : index
    %c0_67 = arith.constant 0 : index
    %68 = tpu.strided_load %arg3[%c0_64, %c2_65, %c0_66, %c0_67] {strides = array<i32: 1, 1, 2, 1>} : memref<1x4x16x16xf32, #tpu.memory_space<vmem>>, vector<1x1x8x16xf32>
    %69 = vector.shape_cast %68 : vector<1x1x8x16xf32> to vector<1x8x16xf32>
    %70 = vector.shape_cast %69 : vector<1x8x16xf32> to vector<8x16xf32>
    %71 = tpu.transpose %70, [1, 0] : vector<8x16xf32> -> vector<16x8xf32>
    %c0_68 = arith.constant 0 : index
    %c0_69 = arith.constant 0 : index
    %72 = vector.load %arg5[%c0_68, %c0_69] : memref<16x8xf32, #tpu.memory_space<vmem>>, vector<16x8xf32>
    tpu.vector_store %arg5[%c0_68, %c0_69], %71 {strides = array<i32>} : memref<16x8xf32, #tpu.memory_space<vmem>>, vector<16x8xf32>,
    %c0_70 = arith.constant 0 : index
    %c0_71 = arith.constant 0 : index
    %73 = tpu.strided_load %arg5[%c0_70, %c0_71] {strides = array<i32: 2, 1>} : memref<16x8xf32, #tpu.memory_space<vmem>>, vector<8x8xf32>
    %74 = tpu.transpose %73, [1, 0] : vector<8x8xf32> -> vector<8x8xf32>
    %75 = vector.shape_cast %74 : vector<8x8xf32> to vector<1x8x8xf32>
    %c0_72 = arith.constant 0 : index
    %c8 = arith.constant 8 : index
    %c0_73 = arith.constant 0 : index
    %c0_74 = arith.constant 0 : index
    %76 = vector.load %arg4[%c0_72, %c8, %c0_73, %c0_74] : memref<1x16x8x8xf32, #tpu.memory_space<vmem>>, vector<1x1x8x8xf32>
    %77 = vector.shape_cast %76 : vector<1x1x8x8xf32> to vector<1x8x8xf32>
    %78 = vector.shape_cast %75 : vector<1x8x8xf32> to vector<1x1x8x8xf32>
    tpu.vector_store %arg4[%c0_72, %c8, %c0_73, %c0_74], %78 {strides = array<i32>} : memref<1x16x8x8xf32, #tpu.memory_space<vmem>>, vector<1x1x8x8xf32>,
    %c1_75 = arith.constant 1 : index
    %c0_76 = arith.constant 0 : index
    %79 = tpu.strided_load %arg5[%c1_75, %c0_76] {strides = array<i32: 2, 1>} : memref<16x8xf32, #tpu.memory_space<vmem>>, vector<8x8xf32>
    %80 = tpu.transpose %79, [1, 0] : vector<8x8xf32> -> vector<8x8xf32>
    %81 = vector.shape_cast %80 : vector<8x8xf32> to vector<1x8x8xf32>
    %c0_77 = arith.constant 0 : index
    %c9 = arith.constant 9 : index
    %c0_78 = arith.constant 0 : index
    %c0_79 = arith.constant 0 : index
    %82 = vector.load %arg4[%c0_77, %c9, %c0_78, %c0_79] : memref<1x16x8x8xf32, #tpu.memory_space<vmem>>, vector<1x1x8x8xf32>
    %83 = vector.shape_cast %82 : vector<1x1x8x8xf32> to vector<1x8x8xf32>
    %84 = vector.shape_cast %81 : vector<1x8x8xf32> to vector<1x1x8x8xf32>
    tpu.vector_store %arg4[%c0_77, %c9, %c0_78, %c0_79], %84 {strides = array<i32>} : memref<1x16x8x8xf32, #tpu.memory_space<vmem>>, vector<1x1x8x8xf32>,
    %c0_80 = arith.constant 0 : index
    %c2_81 = arith.constant 2 : index
    %c1_82 = arith.constant 1 : index
    %c0_83 = arith.constant 0 : index
    %85 = tpu.strided_load %arg3[%c0_80, %c2_81, %c1_82, %c0_83] {strides = array<i32: 1, 1, 2, 1>} : memref<1x4x16x16xf32, #tpu.memory_space<vmem>>, vector<1x1x8x16xf32>
    %86 = vector.shape_cast %85 : vector<1x1x8x16xf32> to vector<1x8x16xf32>
    %87 = vector.shape_cast %86 : vector<1x8x16xf32> to vector<8x16xf32>
    %88 = tpu.transpose %87, [1, 0] : vector<8x16xf32> -> vector<16x8xf32>
    %c0_84 = arith.constant 0 : index
    %c0_85 = arith.constant 0 : index
    %89 = vector.load %arg5[%c0_84, %c0_85] : memref<16x8xf32, #tpu.memory_space<vmem>>, vector<16x8xf32>
    tpu.vector_store %arg5[%c0_84, %c0_85], %88 {strides = array<i32>} : memref<16x8xf32, #tpu.memory_space<vmem>>, vector<16x8xf32>,
    %c0_86 = arith.constant 0 : index
    %c0_87 = arith.constant 0 : index
    %90 = tpu.strided_load %arg5[%c0_86, %c0_87] {strides = array<i32: 2, 1>} : memref<16x8xf32, #tpu.memory_space<vmem>>, vector<8x8xf32>
    %91 = tpu.transpose %90, [1, 0] : vector<8x8xf32> -> vector<8x8xf32>
    %92 = vector.shape_cast %91 : vector<8x8xf32> to vector<1x8x8xf32>
    %c0_88 = arith.constant 0 : index
    %c10 = arith.constant 10 : index
    %c0_89 = arith.constant 0 : index
    %c0_90 = arith.constant 0 : index
    %93 = vector.load %arg4[%c0_88, %c10, %c0_89, %c0_90] : memref<1x16x8x8xf32, #tpu.memory_space<vmem>>, vector<1x1x8x8xf32>
    %94 = vector.shape_cast %93 : vector<1x1x8x8xf32> to vector<1x8x8xf32>
    %95 = vector.shape_cast %92 : vector<1x8x8xf32> to vector<1x1x8x8xf32>
    tpu.vector_store %arg4[%c0_88, %c10, %c0_89, %c0_90], %95 {strides = array<i32>} : memref<1x16x8x8xf32, #tpu.memory_space<vmem>>, vector<1x1x8x8xf32>,
    %c1_91 = arith.constant 1 : index
    %c0_92 = arith.constant 0 : index
    %96 = tpu.strided_load %arg5[%c1_91, %c0_92] {strides = array<i32: 2, 1>} : memref<16x8xf32, #tpu.memory_space<vmem>>, vector<8x8xf32>
    %97 = tpu.transpose %96, [1, 0] : vector<8x8xf32> -> vector<8x8xf32>
    %98 = vector.shape_cast %97 : vector<8x8xf32> to vector<1x8x8xf32>
    %c0_93 = arith.constant 0 : index
    %c11 = arith.constant 11 : index
    %c0_94 = arith.constant 0 : index
    %c0_95 = arith.constant 0 : index
    %99 = vector.load %arg4[%c0_93, %c11, %c0_94, %c0_95] : memref<1x16x8x8xf32, #tpu.memory_space<vmem>>, vector<1x1x8x8xf32>
    %100 = vector.shape_cast %99 : vector<1x1x8x8xf32> to vector<1x8x8xf32>
    %101 = vector.shape_cast %98 : vector<1x8x8xf32> to vector<1x1x8x8xf32>
    tpu.vector_store %arg4[%c0_93, %c11, %c0_94, %c0_95], %101 {strides = array<i32>} : memref<1x16x8x8xf32, #tpu.memory_space<vmem>>, vector<1x1x8x8xf32>,
    %c0_96 = arith.constant 0 : index
    %c3_97 = arith.constant 3 : index
    %c0_98 = arith.constant 0 : index
    %c0_99 = arith.constant 0 : index
    %102 = tpu.strided_load %arg3[%c0_96, %c3_97, %c0_98, %c0_99] {strides = array<i32: 1, 1, 2, 1>} : memref<1x4x16x16xf32, #tpu.memory_space<vmem>>, vector<1x1x8x16xf32>
    %103 = vector.shape_cast %102 : vector<1x1x8x16xf32> to vector<1x8x16xf32>
    %104 = vector.shape_cast %103 : vector<1x8x16xf32> to vector<8x16xf32>
    %105 = tpu.transpose %104, [1, 0] : vector<8x16xf32> -> vector<16x8xf32>
    %c0_100 = arith.constant 0 : index
    %c0_101 = arith.constant 0 : index
    %106 = vector.load %arg5[%c0_100, %c0_101] : memref<16x8xf32, #tpu.memory_space<vmem>>, vector<16x8xf32>
    tpu.vector_store %arg5[%c0_100, %c0_101], %105 {strides = array<i32>} : memref<16x8xf32, #tpu.memory_space<vmem>>, vector<16x8xf32>,
    %c0_102 = arith.constant 0 : index
    %c0_103 = arith.constant 0 : index
    %107 = tpu.strided_load %arg5[%c0_102, %c0_103] {strides = array<i32: 2, 1>} : memref<16x8xf32, #tpu.memory_space<vmem>>, vector<8x8xf32>
    %108 = tpu.transpose %107, [1, 0] : vector<8x8xf32> -> vector<8x8xf32>
    %109 = vector.shape_cast %108 : vector<8x8xf32> to vector<1x8x8xf32>
    %c0_104 = arith.constant 0 : index
    %c12 = arith.constant 12 : index
    %c0_105 = arith.constant 0 : index
    %c0_106 = arith.constant 0 : index
    %110 = vector.load %arg4[%c0_104, %c12, %c0_105, %c0_106] : memref<1x16x8x8xf32, #tpu.memory_space<vmem>>, vector<1x1x8x8xf32>
    %111 = vector.shape_cast %110 : vector<1x1x8x8xf32> to vector<1x8x8xf32>
    %112 = vector.shape_cast %109 : vector<1x8x8xf32> to vector<1x1x8x8xf32>
    tpu.vector_store %arg4[%c0_104, %c12, %c0_105, %c0_106], %112 {strides = array<i32>} : memref<1x16x8x8xf32, #tpu.memory_space<vmem>>, vector<1x1x8x8xf32>,
    %c1_107 = arith.constant 1 : index
    %c0_108 = arith.constant 0 : index
    %113 = tpu.strided_load %arg5[%c1_107, %c0_108] {strides = array<i32: 2, 1>} : memref<16x8xf32, #tpu.memory_space<vmem>>, vector<8x8xf32>
    %114 = tpu.transpose %113, [1, 0] : vector<8x8xf32> -> vector<8x8xf32>
    %115 = vector.shape_cast %114 : vector<8x8xf32> to vector<1x8x8xf32>
    %c0_109 = arith.constant 0 : index
    %c13 = arith.constant 13 : index
    %c0_110 = arith.constant 0 : index
    %c0_111 = arith.constant 0 : index
    %116 = vector.load %arg4[%c0_109, %c13, %c0_110, %c0_111] : memref<1x16x8x8xf32, #tpu.memory_space<vmem>>, vector<1x1x8x8xf32>
    %117 = vector.shape_cast %116 : vector<1x1x8x8xf32> to vector<1x8x8xf32>
    %118 = vector.shape_cast %115 : vector<1x8x8xf32> to vector<1x1x8x8xf32>
    tpu.vector_store %arg4[%c0_109, %c13, %c0_110, %c0_111], %118 {strides = array<i32>} : memref<1x16x8x8xf32, #tpu.memory_space<vmem>>, vector<1x1x8x8xf32>,
    %c0_112 = arith.constant 0 : index
    %c3_113 = arith.constant 3 : index
    %c1_114 = arith.constant 1 : index
    %c0_115 = arith.constant 0 : index
    %119 = tpu.strided_load %arg3[%c0_112, %c3_113, %c1_114, %c0_115] {strides = array<i32: 1, 1, 2, 1>} : memref<1x4x16x16xf32, #tpu.memory_space<vmem>>, vector<1x1x8x16xf32>
    %120 = vector.shape_cast %119 : vector<1x1x8x16xf32> to vector<1x8x16xf32>
    %121 = vector.shape_cast %120 : vector<1x8x16xf32> to vector<8x16xf32>
    %122 = tpu.transpose %121, [1, 0] : vector<8x16xf32> -> vector<16x8xf32>
    %c0_116 = arith.constant 0 : index
    %c0_117 = arith.constant 0 : index
    %123 = vector.load %arg5[%c0_116, %c0_117] : memref<16x8xf32, #tpu.memory_space<vmem>>, vector<16x8xf32>
    tpu.vector_store %arg5[%c0_116, %c0_117], %122 {strides = array<i32>} : memref<16x8xf32, #tpu.memory_space<vmem>>, vector<16x8xf32>,
    %c0_118 = arith.constant 0 : index
    %c0_119 = arith.constant 0 : index
    %124 = tpu.strided_load %arg5[%c0_118, %c0_119] {strides = array<i32: 2, 1>} : memref<16x8xf32, #tpu.memory_space<vmem>>, vector<8x8xf32>
    %125 = tpu.transpose %124, [1, 0] : vector<8x8xf32> -> vector<8x8xf32>
    %126 = vector.shape_cast %125 : vector<8x8xf32> to vector<1x8x8xf32>
    %c0_120 = arith.constant 0 : index
    %c14 = arith.constant 14 : index
    %c0_121 = arith.constant 0 : index
    %c0_122 = arith.constant 0 : index
    %127 = vector.load %arg4[%c0_120, %c14, %c0_121, %c0_122] : memref<1x16x8x8xf32, #tpu.memory_space<vmem>>, vector<1x1x8x8xf32>
    %128 = vector.shape_cast %127 : vector<1x1x8x8xf32> to vector<1x8x8xf32>
    %129 = vector.shape_cast %126 : vector<1x8x8xf32> to vector<1x1x8x8xf32>
    tpu.vector_store %arg4[%c0_120, %c14, %c0_121, %c0_122], %129 {strides = array<i32>} : memref<1x16x8x8xf32, #tpu.memory_space<vmem>>, vector<1x1x8x8xf32>,
    %c1_123 = arith.constant 1 : index
    %c0_124 = arith.constant 0 : index
    %130 = tpu.strided_load %arg5[%c1_123, %c0_124] {strides = array<i32: 2, 1>} : memref<16x8xf32, #tpu.memory_space<vmem>>, vector<8x8xf32>
    %131 = tpu.transpose %130, [1, 0] : vector<8x8xf32> -> vector<8x8xf32>
    %132 = vector.shape_cast %131 : vector<8x8xf32> to vector<1x8x8xf32>
    %c0_125 = arith.constant 0 : index
    %c15 = arith.constant 15 : index
    %c0_126 = arith.constant 0 : index
    %c0_127 = arith.constant 0 : index
    %133 = vector.load %arg4[%c0_125, %c15, %c0_126, %c0_127] : memref<1x16x8x8xf32, #tpu.memory_space<vmem>>, vector<1x1x8x8xf32>
    %134 = vector.shape_cast %133 : vector<1x1x8x8xf32> to vector<1x8x8xf32>
    %135 = vector.shape_cast %132 : vector<1x8x8xf32> to vector<1x1x8x8xf32>
    tpu.vector_store %arg4[%c0_125, %c15, %c0_126, %c0_127], %135 {strides = array<i32>} : memref<1x16x8x8xf32, #tpu.memory_space<vmem>>, vector<1x1x8x8xf32>,
    return
  }
  func.func @transform_0(%arg0: i32, %arg1: i32, %arg2: i32) -> (i32, i32, i32, i32) {
    %c0_i32 = arith.constant 0 : i32
    %c0_i32_0 = arith.constant 0 : i32
    return %arg0, %arg1, %arg2, %c0_i32 : i32, i32, i32, i32
  }
  func.func @transform_1(%arg0: i32, %arg1: i32, %arg2: i32) -> (i32, i32, i32, i32) {
    %c0_i32 = arith.constant 0 : i32
    %c0_i32_0 = arith.constant 0 : i32
    return %arg0, %arg1, %arg2, %c0_i32 : i32, i32, i32, i32
  }
}

</mosaic_0001>

<bundles_post_ra>
// kernel: tpu_custom_call.1
= control target key start
LH: loop header
LB: loop body
LE: loop exit
PB: predicated region body
PF: predicated region fallthrough
CT: control target
= control target key end

     0   :  { %6 = vsyncpa [#allocation4], 0  ;;  %s1481_s0 = inlined_call_operand.hbm [shape: f32[2,4,16,16], index: 0, kind: input, shape index: {}]   ;;  %s1482_s1 = inlined_call_operand.vmem [shape: f32[2,16,8,8], index: 1, kind: output, shape index: {}]  }
   0x1   :  { %8 = vsyncpa [#allocation4 + $0x1], 0  ;;  %s1335_s6 = smov 0   ;;  %s1337_s7 = smov 0  }
   0x2   :  { %s1339_s8 = smov 0   ;;  %s1341_s9 = smov 0  }
   0x3   :  { %s1343_s10 = smov 0   ;;  %s1345_s11 = smov 0  }
   0x4 LB: > { %s1147_s12 = sadd.s32 4294967295, %s1320_s11   ;;  %s33_s13 = sadd.s32 1, %s1316_s10  ;;  %s1320_s11 = sphi %s1345_s11, %s14_s11   ;;  %s1316_s10 = sphi %s1343_s10, %s1490_s10   ;;  %s1312_s9 = sphi %s1341_s9, %s1489_s9   ;;  %s1308_s8 = sphi %s1339_s8, %s1488_s8   ;;  %s1304_s7 = sphi %s1337_s7, %s1487_s7   ;;  %s1300_s6 = sphi %s1335_s6, %s1486_s6  }
   0x5   : > { %p35_p0 = scmp.ge.s32.totalorder %s33_s13, 2  ;;  %s44_s14 = sadd.s32 1, %s1308_s8 }
   0x6   : > { %p51_p1 = scmp.ne.s32.totalorder %s1308_s8, %s1304_s7  ;;  %p52_p2 = scmp.eq.s32.totalorder %s1320_s11, 0 }
   0x7   : > { %s1492_s13 = smov (%p35_p0, %s33_s13), 0  ;;  %p57_p4 = scmp.ne.s32.totalorder %s1304_s7, %s1300_s6 }
   0x8   : > { %p1371_p3 = por %p52_p2, %p51_p1  ;;  %s37_s16 = ssub.s32 %s1316_s10, %s1492_s13 }
   0x9   : > { %p58_p5 = scmp.eq.s32.totalorder %s1147_s12, 0  ;;  %p42_p6 = scmp.eq.s32.totalorder %s37_s16, 0 }
   0xa   : > { %p1190_p8 = scmp.lt.s32.totalorder %s1320_s11, 2  ;;  %s111_s19 = sand.u32 1, %s1308_s8  }
   0xb   : > { %p1378_p7 = por %p58_p5, %p57_p4  ;;  %s1182_s20 = sshll.u32 %s1316_s10, 10 }
   0xc   : > { %s1384_s18 = scalar_select %p42_p6, %s1308_s8, %s44_s14  }
   0xd   : > { %s1151_s21 = sshll.u32 %s111_s19, 6  ;;  %s126_s24 = scalar_lea.hbm %s1481_s0, %s1182_s20 }
   0xe   : > { %s115_s25 = scalar_lea.vmem [#allocation3], %s1151_s21  ;;  %p1393_p9 = pnand %p1190_p8, %p1371_p3 }
   0xf   : > { %s127_s26 = sshll.u32 %s115_s25, 4  ;;  %s112_s28 = scalar_lea.sflag [#allocation4], %s111_s19  ;;  %s128_s26 = int_to_ptr.vmem [resolvable:$true] %s127_s26 }
  0x10   : > { %p1244_p10 = pneg %p1393_p9  ;;  %s1255_s29 = scalar_lea.vmem %s128_s26, 1024 }
  0x11   : > { %p1256_p11 = scmp.ne.s32.totalorder %s128_s26, %s1255_s29  ;;  %s1322_s30 = smov [#allocation3]  }
  0x12   : > { %s1260_s2 = sshll.u32 %s1322_s30, 4  ;;  %s1261_s2 = int_to_ptr.vmem [resolvable:$false] %s1260_s2 }
  0x13   : > { %p1258_p12 = pnand %p1256_p11, %p1244_p10  ;;  %s1262_s3 = scalar_lea.vmem %s1261_s2, 2048 }
  0x14   : > { %p1263_p0 = scmp.lt.s32.totalorder %s128_s26, %s1261_s2  ;;  %p1264_p1 = scmp.lt.s32.totalorder %s1262_s3, %s1255_s29 }
  0x15   : > { %p1259_p13 = pneg %p1258_p12 }
  0x16   : > { %p1265_p2 = por %p1264_p1, %p1263_p0 }
  0x18   : > { %p1266_p3 = pnand %p1265_p2, %p1259_p13 }
  0x1a   : > { %1269 = shalt.err (!%p1266_p3)
}
  0x1b   : > { %s1323_s4 = smov 128   ;;  %s1324_s5 = smov 8  }
  0x1c   : > { %1189 = dma.hbm_to_vmem [thread:$0]  (!%p1393_p9), %s126_s24, 1024, %s128_s26, %s112_s28, %s1323_s4, %s1323_s4, %s1324_s5  }
  0x1d   : > { %p1154_p4 = scmp.ge.s32.totalorder %s1320_s11, 1  ;;  %p135_p5 = scmp.lt.s32.totalorder %s1320_s11, 3 }
  0x1f   : > { %p136_p6 = pnand %p1154_p4, %p135_p5 }
  0x20   : > { %s141_s6 = sand.u32 (!%p136_p6), 1, %s1304_s7  }
  0x21   : > { %139 = sbr.rel (%p136_p6) target bundleno = 359 (0x167), region = 24  ;;  %s1155_s12 = sshll.u32 (!%p136_p6), %s141_s6, 6 }
  0x22   : > { %s142_s14 = scalar_lea.sflag (!%p136_p6), [#allocation4], %s141_s6  ;;  %s145_s15 = scalar_lea.vmem (!%p136_p6), [#allocation3], %s1155_s12 }
  0x26   : > { %1295 = dma.done.wait (%p1378_p7), %s142_s14, 1024  }
  0x27   : > { %1297 = vsyncadd (%p1378_p7), %s142_s14, 4294966272  ;;  %v186_v0 = vld [vmem:[%s145_s15] ss:$2 sm:$0xff]  ;;  %v1162_v1 = vld [vmem:[%s145_s15 + $0x10] ss:$2 sm:$0xff]  ;;  %vm219_vm0 = vcmask 64512  }
  0x28   : > { %187 = vxpose.xlu0.b32.start.end [1/1] (short) (narrow) %v186_v0, 16  ;;  %400 = vxpose.xlu1.b32.start.end [1/1] (short) (narrow) %v1162_v1, 16  ;;  %v1159_v2 = vld [vmem:[%s145_s15 + $0x1] ss:$2 sm:$0xff]  ;;  %v1165_v3 = vld [vmem:[%s145_s15 + $0x11] ss:$2 sm:$0xff] }
  0x29   : > { %v1168_v4 = vld [vmem:[%s145_s15 + $0x20] ss:$2 sm:$0xff]  ;;  %v1171_v5 = vld [vmem:[%s145_s15 + $0x21] ss:$2 sm:$0xff]  ;;  %v1174_v6 = vld [vmem:[%s145_s15 + $0x30] ss:$2 sm:$0xff] }
  0x2a   : > { %v1177_v7 = vld [vmem:[%s145_s15 + $0x31] ss:$2 sm:$0xff]  ;;  %p174_p7 = scmp.lt.s32.totalorder %s1312_s9, 1 }
  0x2c   : > { %s1494_s9 = smov (!%p174_p7, %s1312_s9), 1 }
  0x2d   : > { %294 = vxpose.xlu0.b32.start.end [1/1] (short) (narrow) %v1159_v2, 16  ;;  %506 = vxpose.xlu1.b32.start.end [1/1] (short) (narrow) %v1165_v3, 16  ;;  %s1183_s16 = sshll.u32 %s1494_s9, 7 }
  0x2e   : > { %s1429_s20 = scalar_lea.vmem %s1482_s1, %s1183_s16 }
  0x32   : > { %612 = vxpose.xlu0.b32.start.end [1/1] (short) (narrow) %v1168_v4, 16  ;;  %718 = vxpose.xlu1.b32.start.end [1/1] (short) (narrow) %v1171_v5, 16 }
  0x37   : > { %824 = vxpose.xlu0.b32.start.end [1/1] (short) (narrow) %v1174_v6, 16  ;;  %930 = vxpose.xlu1.b32.start.end [1/1] (short) (narrow) %v1177_v7, 16 }
  0xa4   : > { %v203_v8 = vpop.trf.xlu0  ;;  %v416_v11 = vpop.trf.xlu1 }
  0xa5   : > { %220 = vst.msk [vmem:[#allocation2] sm:$0xff] %vm219_vm0, %v203_v8 }
  0xa8   : > { %v204_v9 = vpop.trf.xlu0  ;;  %v417_v15 = vpop.trf.xlu1 }
  0xa9   : > { %221 = vst.msk [vmem:[#allocation2 + $0x8] sm:$0xff] %vm219_vm0, %v204_v9 }
  0xac   : > { %v310_v10 = vpop.trf.xlu0  ;;  %v522_v18 = vpop.trf.xlu1 }
  0xb0   : > { %v222_v12 = vld [vmem:[#allocation2] ss:$2 sm:$0xff]  ;;  %v257_v13 = vld [vmem:[#allocation2 + $0x1] ss:$2 sm:$0xff]  ;;  %v311_v14 = vpop.trf.xlu0  ;;  %v523_v19 = vpop.trf.xlu1 }
  0xb1   : > { %326 = vst.msk [vmem:[#allocation2] sm:$0xff] %vm219_vm0, %v310_v10  ;;  %327 = vst.msk [vmem:[#allocation2 + $0x8] sm:$0xff] %vm219_vm0, %v311_v14  ;;  %258 = vxpose.xlu1.b32.start.end [1/1] (short) (narrow) %v257_v13, 8  ;;  %223 = vxpose.xlu0.b32.start.end [1/1] (short) (narrow) %v222_v12, 8 }
  0xb4   : > { %v628_v22 = vpop.trf.xlu0  ;;  %v734_v26 = vpop.trf.xlu1 }
  0xb8   : > { %v328_v16 = vld [vmem:[#allocation2] ss:$2 sm:$0xff]  ;;  %v363_v17 = vld [vmem:[#allocation2 + $0x1] ss:$2 sm:$0xff]  ;;  %v629_v23 = vpop.trf.xlu0  ;;  %v735_v27 = vpop.trf.xlu1 }
  0xb9   : > { %432 = vst.msk [vmem:[#allocation2] sm:$0xff] %vm219_vm0, %v416_v11  ;;  %433 = vst.msk [vmem:[#allocation2 + $0x8] sm:$0xff] %vm219_vm0, %v417_v15  ;;  %364 = vxpose.xlu1.b32.start.end [1/1] (short) (narrow) %v363_v17, 8  ;;  %329 = vxpose.xlu0.b32.start.end [1/1] (short) (narrow) %v328_v16, 8 }
  0xbc   : > { %v840_v30 = vpop.trf.xlu0  ;;  %v946_v34 = vpop.trf.xlu1 }
  0xc0   : > { %v434_v20 = vld [vmem:[#allocation2] ss:$2 sm:$0xff]  ;;  %v469_v21 = vld [vmem:[#allocation2 + $0x1] ss:$2 sm:$0xff]  ;;  %v841_v31 = vpop.trf.xlu0  ;;  %v947_v35 = vpop.trf.xlu1 }
  0xc1   : > { %538 = vst.msk [vmem:[#allocation2] sm:$0xff] %vm219_vm0, %v522_v18  ;;  %539 = vst.msk [vmem:[#allocation2 + $0x8] sm:$0xff] %vm219_vm0, %v523_v19  ;;  %470 = vxpose.xlu1.b32.start.end [1/1] (short) (narrow) %v469_v21, 8  ;;  %435 = vxpose.xlu0.b32.start.end [1/1] (short) (narrow) %v434_v20, 8 }
  0xc8   : > { %v575_v24 = vld [vmem:[#allocation2 + $0x1] ss:$2 sm:$0xff]  ;;  %v540_v25 = vld [vmem:[#allocation2] ss:$2 sm:$0xff] }
  0xc9   : > { %576 = vxpose.xlu1.b32.start.end [1/1] (short) (narrow) %v575_v24, 8  ;;  %541 = vxpose.xlu0.b32.start.end [1/1] (short) (narrow) %v540_v25, 8  ;;  %644 = vst.msk [vmem:[#allocation2] sm:$0xff] %vm219_vm0, %v628_v22  ;;  %645 = vst.msk [vmem:[#allocation2 + $0x8] sm:$0xff] %vm219_vm0, %v629_v23 }
  0xd0   : > { %v681_v28 = vld [vmem:[#allocation2 + $0x1] ss:$2 sm:$0xff]  ;;  %v646_v29 = vld [vmem:[#allocation2] ss:$2 sm:$0xff] }
  0xd1   : > { %682 = vxpose.xlu1.b32.start.end [1/1] (short) (narrow) %v681_v28, 8  ;;  %647 = vxpose.xlu0.b32.start.end [1/1] (short) (narrow) %v646_v29, 8  ;;  %750 = vst.msk [vmem:[#allocation2] sm:$0xff] %vm219_vm0, %v734_v26  ;;  %751 = vst.msk [vmem:[#allocation2 + $0x8] sm:$0xff] %vm219_vm0, %v735_v27 }
  0xd8   : > { %v787_v32 = vld [vmem:[#allocation2 + $0x1] ss:$2 sm:$0xff]  ;;  %v752_v33 = vld [vmem:[#allocation2] ss:$2 sm:$0xff] }
  0xd9   : > { %788 = vxpose.xlu1.b32.start.end [1/1] (short) (narrow) %v787_v32, 8  ;;  %753 = vxpose.xlu0.b32.start.end [1/1] (short) (narrow) %v752_v33, 8  ;;  %856 = vst.msk [vmem:[#allocation2] sm:$0xff] %vm219_vm0, %v840_v30  ;;  %857 = vst.msk [vmem:[#allocation2 + $0x8] sm:$0xff] %vm219_vm0, %v841_v31 }
  0xe0   : > { %v893_v36 = vld [vmem:[#allocation2 + $0x1] ss:$2 sm:$0xff]  ;;  %v858_v37 = vld [vmem:[#allocation2] ss:$2 sm:$0xff] }
  0xe1   : > { %894 = vxpose.xlu1.b32.start.end [1/1] (short) (narrow) %v893_v36, 8  ;;  %859 = vxpose.xlu0.b32.start.end [1/1] (short) (narrow) %v858_v37, 8  ;;  %962 = vst.msk [vmem:[#allocation2] sm:$0xff] %vm219_vm0, %v946_v34  ;;  %963 = vst.msk [vmem:[#allocation2 + $0x8] sm:$0xff] %vm219_vm0, %v947_v35 }
  0xe8   : > { %v999_v38 = vld [vmem:[#allocation2 + $0x1] ss:$2 sm:$0xff]  ;;  %v964_v39 = vld [vmem:[#allocation2] ss:$2 sm:$0xff] }
  0xe9   : > { %1000 = vxpose.xlu1.b32.start.end [1/1] (short) (narrow) %v999_v38, 8  ;;  %965 = vxpose.xlu0.b32.start.end [1/1] (short) (narrow) %v964_v39, 8 }
 0x12d   : > { %v274_v40 = vpop.trf.xlu1  ;;  %v239_v41 = vpop.trf.xlu0 }
 0x12e   : > { %1158 = vst.msk [vmem:[%s1429_s20 + $0x8] sm:$0xff] %vm219_vm0, %v274_v40  ;;  %255 = vst.msk [vmem:[%s1429_s20] sm:$0xff] %vm219_vm0, %v239_v41 }
 0x135   : > { %v380_v42 = vpop.trf.xlu1  ;;  %v345_v43 = vpop.trf.xlu0 }
 0x136   : > { %1161 = vst.msk [vmem:[%s1429_s20 + $0x18] sm:$0xff] %vm219_vm0, %v380_v42  ;;  %1160 = vst.msk [vmem:[%s1429_s20 + $0x10] sm:$0xff] %vm219_vm0, %v345_v43 }
 0x13d   : > { %v486_v44 = vpop.trf.xlu1  ;;  %v451_v45 = vpop.trf.xlu0 }
 0x13e   : > { %1164 = vst.msk [vmem:[%s1429_s20 + $0x28] sm:$0xff] %vm219_vm0, %v486_v44  ;;  %1163 = vst.msk [vmem:[%s1429_s20 + $0x20] sm:$0xff] %vm219_vm0, %v451_v45 }
 0x145   : > { %v592_v46 = vpop.trf.xlu1  ;;  %v557_v47 = vpop.trf.xlu0 }
 0x146   : > { %1167 = vst.msk [vmem:[%s1429_s20 + $0x38] sm:$0xff] %vm219_vm0, %v592_v46  ;;  %1166 = vst.msk [vmem:[%s1429_s20 + $0x30] sm:$0xff] %vm219_vm0, %v557_v47 }
 0x14d   : > { %v698_v48 = vpop.trf.xlu1  ;;  %v663_v49 = vpop.trf.xlu0 }
 0x14e   : > { %1170 = vst.msk [vmem:[%s1429_s20 + $0x48] sm:$0xff] %vm219_vm0, %v698_v48  ;;  %1169 = vst.msk [vmem:[%s1429_s20 + $0x40] sm:$0xff] %vm219_vm0, %v663_v49 }
 0x155   : > { %v804_v50 = vpop.trf.xlu1  ;;  %v769_v51 = vpop.trf.xlu0 }
 0x156   : > { %1173 = vst.msk [vmem:[%s1429_s20 + $0x58] sm:$0xff] %vm219_vm0, %v804_v50  ;;  %1172 = vst.msk [vmem:[%s1429_s20 + $0x50] sm:$0xff] %vm219_vm0, %v769_v51 }
 0x15d   : > { %v910_v52 = vpop.trf.xlu1  ;;  %v875_v53 = vpop.trf.xlu0 }
 0x15e   : > { %1176 = vst.msk [vmem:[%s1429_s20 + $0x68] sm:$0xff] %vm219_vm0, %v910_v52  ;;  %1175 = vst.msk [vmem:[%s1429_s20 + $0x60] sm:$0xff] %vm219_vm0, %v875_v53 }
 0x165   : > { %v1016_v54 = vpop.trf.xlu1  ;;  %v981_v55 = vpop.trf.xlu0 }
 0x166   : > { %1179 = vst.msk [vmem:[%s1429_s20 + $0x78] sm:$0xff] %vm219_vm0, %v1016_v54  ;;  %1178 = vst.msk [vmem:[%s1429_s20 + $0x70] sm:$0xff] %vm219_vm0, %v981_v55 }
 0x167 PF: > { %s14_s11 = sadd.s32 1, %s1320_s11   ;;  %s1486_s6 = smov %s1304_s7 }
 0x168   : > { %p11_p8 = scmp.ge.s32.totalorder %s14_s11, 4   ;;  %s1487_s7 = smov %s1308_s8 }
 0x169   : > { %s1488_s8 = smov %s1384_s18  ;;  %s1489_s9 = smov %s1316_s10 }
 0x16a   : > { %s1490_s10 = smov %s1492_s13  ;;  %13 = sbr.rel (!%p11_p8) target bundleno = 4 (0x4), region = 87 }
 0x16f   :  { %1070 = vsyncpa [#allocation4], 1 }
 0x170   :  { %1072 = vsyncpa [#allocation4 + $0x1], 1 }

</bundles_post_ra>
